<compile_context>
chip_gen: v7x
topology: tpu7x:2x2x1
jax: 0.10.0
libtpu: 0.0.40
codegen_flags: <defaults>
</compile_context>

<pallas_src>
import jax
import jax.numpy as jnp
from jax.experimental import pallas as pl
from jax.experimental.pallas import tpu as pltpu

A_NUM = 9
NUM_CLASSES = 20
H_FEAT = W_FEAT = 7
HIDDEN = 128
IN_DIM = 64          # module uses in_dim=1280 (MobileNetV2); reduced for a small synthetic test
LEAKY_SLOPE = 0.01   # nn.LeakyReLU() default
NEG_THRESH = 0.2
DOUT = 5 * A_NUM + NUM_CLASSES   # 65

ANCHOR_LIST = jnp.array(
    [[1.0, 1.0], [2, 2], [3, 3], [4, 4], [5, 5], [2, 3], [3, 2], [3, 5], [5, 3]],
    dtype=jnp.float32)


# ----------------------------------------------------------------------------
# Pallas kernel: fused PredictionNetwork head
#   1x1 conv -> LeakyReLU -> 1x1 conv -> per-channel sigmoid / (sigmoid - 0.5)
# Channel masks are compile-time constants built from broadcasted_iota (no mask DMAs);
# sigmoid uses exp on the EUP + approximate reciprocal (EUP slot) instead of a vector divide.
# ----------------------------------------------------------------------------
def _pred_head_kernel(x_ref, w1_ref, b1_ref, w2_ref, b2_ref, out_ref):
    x = x_ref[...]                                                       # (Mp, Cin_p) bf16
    h = jnp.dot(x, w1_ref[...], preferred_element_type=jnp.float32) + b1_ref[...]
    h = jnp.where(h > 0, h, LEAKY_SLOPE * h)                             # LeakyReLU (f32 VPU)
    # TODO(synk): nn.Dropout(p=0.3) has no deterministic equivalent here; treated as identity.
    y = jnp.dot(h.astype(jnp.bfloat16), w2_ref[...],
                preferred_element_type=jnp.float32) + b2_ref[...]        # (Mp, Dout_p)

    # Static per-channel masks: channels [0, 5A) are anchor data (5 per anchor):
    #   d==0 conf (sigmoid), d==1,2 xy offsets (sigmoid - 0.5), d==3,4 wh offsets (raw),
    # channels [5A, 5A+C) are raw class logits, padded channels beyond that are don't-care.
    ch = jax.lax.broadcasted_iota(jnp.int32, y.shape, dimension=1)
    d = ch % 5
    is_anchor = ch < 5 * A_NUM
    sig_mask = is_anchor & (d <= 2)
    shift_mask = is_anchor & (d >= 1) & (d <= 2)

    y_for_sig = jnp.where(sig_mask, y, 0.0)                  # avoid exp overflow on raw logits
    ysig = pl.reciprocal(1.0 + jnp.exp(-y_for_sig), approx=True)
    shift = jnp.where(shift_mask, jnp.float32(0.5), jnp.float32(0.0))
    out_ref[...] = jnp.where(sig_mask, ysig, y) - shift


def _round_up(x, m):
    return ((x + m - 1) // m) * m


def pred_head(x_rows, w1, b1, w2, b2):
    """x_rows: (M, Cin) f32 -> (M, DOUT) f32.  Pads M, Cin, Dout to multiples of 128 so the
    MXU tiles are full and the output store path is lane-dense (unmasked vst)."""
    m, cin = x_rows.shape
    dout = w2.shape[1]
    m_p = _round_up(m, 128)
    cin_p = _round_up(cin, 128)
    dout_p = _round_up(dout, 128)

    x_p = jnp.zeros((m_p, cin_p), jnp.bfloat16).at[:m, :cin].set(x_rows.astype(jnp.bfloat16))
    w1_p = jnp.zeros((cin_p, HIDDEN), jnp.bfloat16).at[:cin, :].set(w1.astype(jnp.bfloat16))
    w2_p = jnp.zeros((HIDDEN, dout_p), jnp.bfloat16).at[:, :dout].set(w2.astype(jnp.bfloat16))
    b2_p = jnp.zeros((1, dout_p), jnp.float32).at[:, :dout].set(b2)

    # Single gridless launch: everything fits VMEM trivially at this size.  At real scale
    # (IN_DIM=1280, big B) tile M via a BlockSpec grid marked "parallel" and cap vmem_limit_bytes.
    y = pl.pallas_call(
        _pred_head_kernel,
        out_shape=jax.ShapeDtypeStruct((m_p, dout_p), jnp.float32),
        in_specs=[pl.BlockSpec(memory_space=pltpu.MemorySpace.VMEM)] * 5,
        out_specs=pl.BlockSpec(memory_space=pltpu.MemorySpace.VMEM),
    )(x_p, w1_p, b1, w2_p, b2_p)
    return y[:m, :dout]


# ----------------------------------------------------------------------------
# Plain-JAX glue (grid/anchor generation, IoU, anchor assignment, gathers, losses)
# ----------------------------------------------------------------------------
def generate_grid(batch_size, w_amap=7, h_amap=7):
    # GenerateGrid (A5 helper; source not provided — standard re-implementation).
    w_range = jnp.arange(w_amap, dtype=jnp.float32) + 0.5
    h_range = jnp.arange(h_amap, dtype=jnp.float32) + 0.5
    w_grid = jnp.tile(w_range[None, :], (h_amap, 1))
    h_grid = jnp.tile(h_range[:, None], (1, w_amap))
    grid = jnp.stack([w_grid, h_grid], axis=-1)                       # (H, W, 2)
    return jnp.broadcast_to(grid[None], (batch_size, h_amap, w_amap, 2))


def generate_anchor(anc, grid):
    tl = grid[:, None, :, :, :] - 0.5 * anc[None, :, None, None, :]
    br = grid[:, None, :, :, :] + 0.5 * anc[None, :, None, None, :]
    return jnp.concatenate([tl, br], axis=-1)                         # (B, A, H, W, 4)


def iou_jax(proposals_flat, bboxes):
    # proposals_flat: (B, AHW, 4), bboxes: (B, N, 5) -> (B, AHW, N).  Tiny; let XLA fuse it.
    p = proposals_flat[:, :, None, :]                                 # (B, AHW, 1, 4)
    b = bboxes[:, None, :, :4]                                        # (B, 1, N, 4)
    ix1 = jnp.maximum(p[..., 0], b[..., 0]); iy1 = jnp.maximum(p[..., 1], b[..., 1])
    ix2 = jnp.minimum(p[..., 2], b[..., 2]); iy2 = jnp.minimum(p[..., 3], b[..., 3])
    inter = jnp.maximum(ix2 - ix1, 0.0) * jnp.maximum(iy2 - iy1, 0.0)
    pa = jnp.maximum(p[..., 2] - p[..., 0], 0.0) * jnp.maximum(p[..., 3] - p[..., 1], 0.0)
    ba = jnp.maximum(b[..., 2] - b[..., 0], 0.0) * jnp.maximum(b[..., 3] - b[..., 1], 0.0)
    return inter / jnp.maximum(pa + ba - inter, 1e-8)


def reference_on_activated_anchors(anchors, bboxes, grid, iou_mat):
    # TODO(synk): ReferenceOnActivatedAnchors source was not provided; deterministic fixed-M
    # (M = B*N, all GT boxes assumed valid) re-implementation of the YOLO assignment; negatives
    # are the M lowest-max-IoU anchors below NEG_THRESH (positives excluded) instead of a
    # random sample.
    B, A, H, W, _ = anchors.shape
    N = bboxes.shape[1]
    HW = H * W
    AHW = A * HW
    grid_flat = grid.reshape(B, HW, 2)
    box_centers = (bboxes[:, :, 0:2] + bboxes[:, :, 2:4]) * 0.5       # (B, N, 2)
    mah = jnp.sum(jnp.abs(grid_flat[:, None, :, :] - box_centers[:, :, None, :]), axis=-1)
    cell_idx = jnp.argmin(mah, axis=-1)                               # (B, N)

    iou_r = iou_mat.reshape(B, A, HW, N)
    b_ix = jnp.arange(B)[:, None, None]
    a_ix = jnp.arange(A)[None, :, None]
    n_ix = jnp.arange(N)[None, None, :]
    iou_cell = iou_r[b_ix, a_ix, cell_idx[:, None, :], n_ix]          # (B, A, N)
    best_a = jnp.argmax(iou_cell, axis=1)                             # (B, N)

    pos_anchor_idx = (jnp.arange(B)[:, None] * AHW + best_a * HW + cell_idx).reshape(-1)
    GT_conf_scores = iou_cell[jnp.arange(B)[:, None], best_a, jnp.arange(N)[None, :]].reshape(-1)

    anchors_flat = anchors.reshape(-1, 4)
    anc_pos = jnp.take(anchors_flat, pos_anchor_idx, axis=0)          # (M, 4)
    boxes_flat = bboxes.reshape(B * N, 5)
    GT_class = boxes_flat[:, 4].astype(jnp.int32)
    xy_off = (boxes_flat[:, 0:2] + boxes_flat[:, 2:4] - anc_pos[:, 0:2] - anc_pos[:, 2:4]) * 0.5
    wh_ratio = jnp.maximum(
        (boxes_flat[:, 2:4] - boxes_flat[:, 0:2]) /
        jnp.maximum(anc_pos[:, 2:4] - anc_pos[:, 0:2], 1e-8), 1e-8)
    wh_off = jnp.log(wh_ratio)
    GT_offsets = jnp.concatenate([xy_off, wh_off], axis=-1)

    M = B * N
    max_iou_per_anc = jnp.max(iou_mat, axis=-1).reshape(-1)
    neg_scores = jnp.where(max_iou_per_anc >= NEG_THRESH, jnp.inf, max_iou_per_anc)
    neg_scores = neg_scores.at[pos_anchor_idx].set(jnp.inf)           # never pick a positive
    neg_anchor_idx = jnp.argsort(neg_scores)[:M]
    return pos_anchor_idx, neg_anchor_idx, GT_conf_scores, GT_offsets, GT_class


def prediction_network_forward(features_nhwc, params, pos_anchor_idx, neg_anchor_idx):
    """features_nhwc: (B, H, W, Cin).  Gathers are done directly on the row-major
    (B*H*W, 5A+C) prediction slab — no NHWC->NCHW->NHWC relayout round trip."""
    B, H, W, Cin = features_nhwc.shape
    A, C = A_NUM, NUM_CLASSES
    HW = H * W
    x_rows = features_nhwc.reshape(B * HW, Cin)
    y_flat = pred_head(x_rows, params["w1"], params["b1"], params["w2"], params["b2"])  # (B*HW, 5A+C)

    def split_idx(idx):
        # anchor idx is flattened over (B, A, H, W) -> row into y_flat + anchor slot a
        b = idx // (A * HW)
        rem = idx % (A * HW)
        a = rem // HW
        hw = rem % HW
        return b * HW + hw, a

    row_pos, a_pos = split_idx(pos_anchor_idx)
    row_neg, a_neg = split_idx(neg_anchor_idx)
    rows_pos = jnp.take(y_flat, row_pos, axis=0)                      # (M, 5A+C)
    rows_neg = jnp.take(y_flat, row_neg, axis=0)                      # (M, 5A+C)

    conf_pos = jnp.take_along_axis(rows_pos, (5 * a_pos)[:, None], axis=1)   # (M, 1)
    conf_neg = jnp.take_along_axis(rows_neg, (5 * a_neg)[:, None], axis=1)   # (M, 1)
    conf_scores = jnp.concatenate([conf_pos, conf_neg], axis=0)              # (2M, 1)

    off_cols = 5 * a_pos[:, None] + jnp.arange(1, 5, dtype=a_pos.dtype)[None, :]
    offsets = jnp.take_along_axis(rows_pos, off_cols, axis=1)                # (M, 4)

    class_scores = rows_pos[:, 5 * A:]                                       # (M, C)
    return conf_scores, offsets, class_scores


def conf_score_regression(conf_scores, GT_conf_scores):
    gt = jnp.concatenate([jnp.ones_like(GT_conf_scores),
                          jnp.zeros_like(GT_conf_scores)], axis=0).reshape(-1, 1)
    return jnp.sum((conf_scores - gt) ** 2) / gt.shape[0]


def bbox_regression(offsets, GT_offsets):
    return jnp.sum((offsets - GT_offsets) ** 2) / GT_offsets.shape[0]


def object_classification(class_scores, GT_class, batch_size, anc_per_img):
    lse = jax.nn.logsumexp(class_scores, axis=-1)
    picked = jnp.take_along_axis(class_scores, GT_class[:, None], axis=-1)[:, 0]
    return jnp.sum(lse - picked) / anc_per_img / batch_size


def feature_extractor_standin(images, wf):
    # TODO(synk): FeatureExtractor (MobileNetV2 backbone) was not provided; deterministic
    # stand-in: average-pool to 7x7 and linearly project 3 -> IN_DIM channels (NHWC output).
    B, Cimg, Him, Wim = images.shape
    ph, pw = Him // H_FEAT, Wim // W_FEAT
    pooled = images.reshape(B, Cimg, H_FEAT, ph, W_FEAT, pw).mean(axis=(3, 5))  # (B,3,7,7)
    return jnp.einsum("bchw,cd->bhwd", pooled, wf)                              # (B,7,7,IN_DIM)


def single_stage_detector_forward(images, bboxes, params):
    w_conf = w_reg = w_cls = 1.0
    B = images.shape[0]
    A = ANCHOR_LIST.shape[0]
    features = feature_extractor_standin(images, params["wf"])       # (B, 7, 7, IN_DIM)
    grid = generate_grid(B, W_FEAT, H_FEAT)
    anchors = generate_anchor(ANCHOR_LIST, grid)                      # (B, A, 7, 7, 4)
    iou_mat = iou_jax(anchors.reshape(B, -1, 4), bboxes)              # (B, A*49, N)
    pos_idx, neg_idx, GT_conf, GT_offsets, GT_class = reference_on_activated_anchors(
        anchors, bboxes, grid, iou_mat)
    conf_scores, offsets, class_scores = prediction_network_forward(
        features, params, pos_idx, neg_idx)
    total_loss = (w_conf * conf_score_regression(conf_scores, GT_conf)
                  + w_reg * bbox_regression(offsets, GT_offsets)
                  + w_cls * object_classification(class_scores, GT_class, B,
                                                  H_FEAT * W_FEAT * A))
    return total_loss


if __name__ == "__main__":
    key = jax.random.PRNGKey(0)
    k_img, k_w1, k_b1, k_w2, k_b2, k_wf, k_box = jax.random.split(key, 7)

    B, N = 2, 3
    images = jax.random.normal(k_img, (B, 3, 28, 28), dtype=jnp.float32)

    params = {
        "wf": 0.1 * jax.random.normal(k_wf, (3, IN_DIM), dtype=jnp.float32),
        "w1": 0.05 * jax.random.normal(k_w1, (IN_DIM, HIDDEN), dtype=jnp.float32),
        "b1": 0.01 * jax.random.normal(k_b1, (1, HIDDEN), dtype=jnp.float32),
        "w2": 0.05 * jax.random.normal(k_w2, (HIDDEN, DOUT), dtype=jnp.float32),
        "b2": 0.01 * jax.random.normal(k_b2, (1, DOUT), dtype=jnp.float32),
    }

    # GT boxes in 7x7 activation-map coordinates: (x_tl, y_tl, x_br, y_br, class), all valid.
    centers = jax.random.uniform(k_box, (B, N, 2), minval=1.5, maxval=5.5)
    wh = jax.random.uniform(jax.random.fold_in(k_box, 1), (B, N, 2), minval=0.8, maxval=2.5)
    cls = jax.random.randint(jax.random.fold_in(k_box, 2), (B, N, 1), 0, NUM_CLASSES).astype(jnp.float32)
    bboxes = jnp.concatenate([centers - 0.5 * wh, centers + 0.5 * wh, cls], axis=-1)

    loss = jax.jit(single_stage_detector_forward)(images, bboxes, params)
    jax.block_until_ready(loss)
    assert bool(jnp.isfinite(loss))
    print("KERNEL_OK")
</pallas_src>

<mosaic_0001>
module attributes {stable_mosaic.version = 11 : i64} {
  func.func @_pred_head_kernel(%arg0: memref<128x128xbf16, #tpu.memory_space<vmem>>, %arg1: memref<128x128xbf16, #tpu.memory_space<vmem>>, %arg2: memref<1x128xf32, #tpu.memory_space<vmem>>, %arg3: memref<128x128xbf16, #tpu.memory_space<vmem>>, %arg4: memref<1x128xf32, #tpu.memory_space<vmem>>, %arg5: memref<128x128xf32, #tpu.memory_space<vmem>>) attributes {dimension_semantics = [], scalar_prefetch = 0 : i64, scratch_operands = 0 : i64, tpu.core_type = #tpu.core_type<tc>} {
    %c0 = arith.constant 0 : index
    %c0_0 = arith.constant 0 : index
    %0 = vector.load %arg0[%c0, %c0_0] : memref<128x128xbf16, #tpu.memory_space<vmem>>, vector<128x128xbf16>
    %c0_1 = arith.constant 0 : index
    %c0_2 = arith.constant 0 : index
    %1 = vector.load %arg1[%c0_1, %c0_2] : memref<128x128xbf16, #tpu.memory_space<vmem>>, vector<128x128xbf16>
    %cst = arith.constant dense<0.000000e+00> : vector<128x128xf32>
    %2 = tpu.matmul %0, %1, %cst {dimension_numbers = #tpu.dot_dimension_numbers<[1], [0], [0], [1], [0, 0, 1, 1], [], []>} : vector<128x128xbf16>, vector<128x128xbf16>, vector<128x128xf32> -> vector<128x128xf32>
    %c0_3 = arith.constant 0 : index
    %c0_4 = arith.constant 0 : index
    %3 = vector.load %arg2[%c0_3, %c0_4] : memref<1x128xf32, #tpu.memory_space<vmem>>, vector<1x128xf32>
    %4 = vector.broadcast %3 : vector<1x128xf32> to vector<128x128xf32>
    %5 = arith.addf %2, %4 : vector<128x128xf32>
    %cst_5 = arith.constant 0.000000e+00 : f32
    %6 = vector.broadcast %cst_5 : f32 to vector<128x128xf32>
    %7 = arith.cmpf ogt, %5, %6 : vector<128x128xf32>
    %cst_6 = arith.constant 0.00999999977 : f32
    %8 = vector.broadcast %cst_6 : f32 to vector<128x128xf32>
    %9 = arith.mulf %8, %5 : vector<128x128xf32>
    %10 = arith.select %7, %5, %9 : vector<128x128xi1>, vector<128x128xf32>
    %11 = arith.truncf %10 : vector<128x128xf32> to vector<128x128xbf16>
    %c0_7 = arith.constant 0 : index
    %c0_8 = arith.constant 0 : index
    %12 = vector.load %arg3[%c0_7, %c0_8] : memref<128x128xbf16, #tpu.memory_space<vmem>>, vector<128x128xbf16>
    %cst_9 = arith.constant dense<0.000000e+00> : vector<128x128xf32>
    %13 = tpu.matmul %11, %12, %cst_9 {dimension_numbers = #tpu.dot_dimension_numbers<[1], [0], [0], [1], [0, 0, 1, 1], [], []>} : vector<128x128xbf16>, vector<128x128xbf16>, vector<128x128xf32> -> vector<128x128xf32>
    %c0_10 = arith.constant 0 : index
    %c0_11 = arith.constant 0 : index
    %14 = vector.load %arg4[%c0_10, %c0_11] : memref<1x128xf32, #tpu.memory_space<vmem>>, vector<1x128xf32>
    %15 = vector.broadcast %14 : vector<1x128xf32> to vector<128x128xf32>
    %16 = arith.addf %13, %15 : vector<128x128xf32>
    %17 = tpu.iota {dimensions = array<i32: 1>} : vector<128x128xi32>
    %c5_i32 = arith.constant 5 : i32
    %c0_i32 = arith.constant 0 : i32
    %18 = arith.cmpi eq, %c5_i32, %c0_i32 : i32
    %c1_i32 = arith.constant 1 : i32
    %19 = arith.select %18, %c1_i32, %c5_i32 : i32
    %20 = vector.broadcast %19 : i32 to vector<128x128xi32>
    %21 = arith.remsi %17, %20 : vector<128x128xi32>
    %c0_i32_12 = arith.constant 0 : i32
    %22 = vector.broadcast %c0_i32_12 : i32 to vector<128x128xi32>
    %23 = arith.cmpi ne, %21, %22 : vector<128x128xi32>
    %c0_i32_13 = arith.constant 0 : i32
    %24 = vector.broadcast %c0_i32_13 : i32 to vector<128x128xi32>
    %25 = arith.cmpi slt, %21, %24 : vector<128x128xi32>
    %c0_i32_14 = arith.constant 0 : i32
    %26 = arith.cmpi slt, %19, %c0_i32_14 : i32
    %27 = vector.broadcast %26 : i1 to vector<128x128xi1>
    %28 = vector.broadcast %27 : vector<128x128xi1> to vector<128x128xi1>
    %29 = arith.xori %25, %28 : vector<128x128xi1>
    %30 = arith.andi %29, %23 : vector<128x128xi1>
    %31 = vector.broadcast %19 : i32 to vector<128x128xi32>
    %32 = arith.addi %21, %31 : vector<128x128xi32>
    %33 = arith.select %30, %32, %21 : vector<128x128xi1>, vector<128x128xi32>
    %c45_i32 = arith.constant 45 : i32
    %34 = vector.broadcast %c45_i32 : i32 to vector<128x128xi32>
    %35 = arith.cmpi slt, %17, %34 : vector<128x128xi32>
    %c2_i32 = arith.constant 2 : i32
    %36 = vector.broadcast %c2_i32 : i32 to vector<128x128xi32>
    %37 = arith.cmpi sle, %33, %36 : vector<128x128xi32>
    %38 = arith.andi %35, %37 : vector<128x128xi1>
    %c1_i32_15 = arith.constant 1 : i32
    %39 = vector.broadcast %c1_i32_15 : i32 to vector<128x128xi32>
    %40 = arith.cmpi sge, %33, %39 : vector<128x128xi32>
    %41 = arith.andi %35, %40 : vector<128x128xi1>
    %c2_i32_16 = arith.constant 2 : i32
    %42 = vector.broadcast %c2_i32_16 : i32 to vector<128x128xi32>
    %43 = arith.cmpi sle, %33, %42 : vector<128x128xi32>
    %44 = arith.andi %41, %43 : vector<128x128xi1>
    %cst_17 = arith.constant 0.000000e+00 : f32
    %45 = vector.broadcast %cst_17 : f32 to vector<128x128xf32>
    %46 = arith.select %38, %16, %45 : vector<128x128xi1>, vector<128x128xf32>
    %cst_18 = arith.constant 0.000000e+00 : f32
    %47 = vector.broadcast %cst_18 : f32 to vector<128x128xf32>
    %48 = arith.subf %47, %46 : vector<128x128xf32>
    %49 = math.exp %48 : vector<128x128xf32>
    %cst_19 = arith.constant 1.000000e+00 : f32
    %50 = vector.broadcast %cst_19 : f32 to vector<128x128xf32>
    %51 = arith.addf %50, %49 : vector<128x128xf32>
    %52 = tpu.reciprocal %51 {approx = true} : vector<128x128xf32> -> vector<128x128xf32>
    %cst_20 = arith.constant 5.000000e-01 : f32
    %cst_21 = arith.constant 0.000000e+00 : f32
    %53 = vector.broadcast %cst_20 : f32 to vector<128x128xf32>
    %54 = vector.broadcast %cst_21 : f32 to vector<128x128xf32>
    %55 = arith.select %44, %53, %54 : vector<128x128xi1>, vector<128x128xf32>
    %56 = arith.select %38, %52, %16 : vector<128x128xi1>, vector<128x128xf32>
    %57 = arith.subf %56, %55 : vector<128x128xf32>
    %c0_22 = arith.constant 0 : index
    %c0_23 = arith.constant 0 : index
    %58 = vector.load %arg5[%c0_22, %c0_23] : memref<128x128xf32, #tpu.memory_space<vmem>>, vector<128x128xf32>
    tpu.vector_store %arg5[%c0_22, %c0_23], %57 {strides = array<i32>} : memref<128x128xf32, #tpu.memory_space<vmem>>, vector<128x128xf32>,
    return
  }
}

</mosaic_0001>

<bundles_post_ra>
// kernel: single_stage_detector_forward.1
= control target key start
LH: loop header
LB: loop body
LE: loop exit
PB: predicated region body
PF: predicated region fallthrough
CT: control target
= control target key end

     0   :  { %s1229_s1 = inlined_call_operand.vmem [shape: bf16[128,128], index: 1, kind: input, shape index: {}]   ;;  %s1230_s0 = inlined_call_operand.vmem [shape: bf16[128,128], index: 0, kind: input, shape index: {}]   ;;  %s1231_s3 = inlined_call_operand.vmem [shape: bf16[128,128], index: 3, kind: input, shape index: {}]   ;;  %s1232_s2 = inlined_call_operand.vmem [shape: f32[1,128], index: 2, kind: input, shape index: {}]   ;;  %s1233_s4 = inlined_call_operand.vmem [shape: f32[1,128], index: 4, kind: input, shape index: {}]   ;;  %s1234_s5 = inlined_call_operand.vmem [shape: f32[128,128], index: 5, kind: output, shape index: {}]  }
   0x1   :  { %v775_v0 = vld [vmem:[%s1229_s1] sm:$0xff]   ;;  %v776_v1 = vld [vmem:[%s1229_s1 + $0x8] sm:$0xff]   ;;  %v777_v2 = vld [vmem:[%s1229_s1 + $0x10] sm:$0xff]  }
   0x2   :  { %708 = vmatprep.subr.bf16.mxu0 %v775_v0  ;;  %v778_v3 = vld [vmem:[%s1229_s1 + $0x18] sm:$0xff]   ;;  %v783_v4 = vld [vmem:[%s1230_s0] sm:$0xff]   ;;  %v780_v6 = vld [vmem:[%s1229_s1 + $0x28] sm:$0xff]  }
   0x3   :  { %709 = vmatpush3.bf16.msra.mxu0 %v775_v0  ;;  %724 = vmatprep.mubr.bf16.mxu0 %v783_v4  ;;  %v779_v5 = vld [vmem:[%s1229_s1 + $0x20] sm:$0xff]   ;;  %v792_v8 = vld [vmem:[%s1231_s3 + $0x8] sm:$0xff]   ;;  %v781_v9 = vld [vmem:[%s1229_s1 + $0x30] sm:$0xff]  }
   0x4   :  { %710 = vmatprep.subr.bf16.mxu0 %v776_v1  ;;  %v791_v7 = vld [vmem:[%s1231_s3] sm:$0xff]   ;;  %v793_v10 = vld [vmem:[%s1231_s3 + $0x10] sm:$0xff]   ;;  %v782_v11 = vld [vmem:[%s1229_s1 + $0x38] sm:$0xff]  }
   0x5   :  { %740 = vmatprep.subr.bf16.mxu1 %v791_v7  ;;  %v794_v12 = vld [vmem:[%s1231_s3 + $0x18] sm:$0xff]   ;;  %v795_v13 = vld [vmem:[%s1231_s3 + $0x20] sm:$0xff]   ;;  %v784_v14 = vld [vmem:[%s1230_s0 + $0x8] sm:$0xff]  }
   0x6   :  { %741 = vmatpush3.bf16.msra.mxu1 %v791_v7  ;;  %v785_v15 = vld [vmem:[%s1230_s0 + $0x10] sm:$0xff]   ;;  %v786_v16 = vld [vmem:[%s1230_s0 + $0x18] sm:$0xff]   ;;  %v787_v17 = vld [vmem:[%s1230_s0 + $0x20] sm:$0xff]  }
   0x7   :  { %711 = vmatpush3.bf16.msra.mxu0 %v776_v1  ;;  %742 = vmatprep.subr.bf16.mxu1 %v792_v8  ;;  %v788_v18 = vld [vmem:[%s1230_s0 + $0x28] sm:$0xff]   ;;  %v789_v19 = vld [vmem:[%s1230_s0 + $0x30] sm:$0xff]   ;;  %v790_v20 = vld [vmem:[%s1230_s0 + $0x38] sm:$0xff]  }
   0x8   :  { %712 = vmatprep.subr.bf16.mxu0 %v777_v2  ;;  %v796_v21 = vld [vmem:[%s1231_s3 + $0x28] sm:$0xff]   ;;  %v797_v22 = vld [vmem:[%s1231_s3 + $0x30] sm:$0xff]   ;;  %v798_v23 = vld [vmem:[%s1231_s3 + $0x38] sm:$0xff]  }
   0x9   :  { %v969_v24 = vld [vmem:[%s1232_s2] ss:$0 sm:$0xff] }
   0xa   :  { %743 = vmatpush3.bf16.msra.mxu1 %v792_v8 }
   0xb   :  { %713 = vmatpush3.bf16.msra.mxu0 %v777_v2  ;;  %744 = vmatprep.subr.bf16.mxu1 %v793_v10 }
   0xc   :  { %714 = vmatprep.subr.bf16.mxu0 %v778_v3 }
   0xe   :  { %745 = vmatpush3.bf16.msra.mxu1 %v793_v10 }
   0xf   :  { %715 = vmatpush3.bf16.msra.mxu0 %v778_v3  ;;  %746 = vmatprep.subr.bf16.mxu1 %v794_v12 }
  0x10   :  { %716 = vmatprep.subr.bf16.mxu0 %v779_v5 }
  0x12   :  { %747 = vmatpush3.bf16.msra.mxu1 %v794_v12 }
  0x13   :  { %717 = vmatpush3.bf16.msra.mxu0 %v779_v5  ;;  %748 = vmatprep.subr.bf16.mxu1 %v795_v13 }
  0x14   :  { %718 = vmatprep.subr.bf16.mxu0 %v780_v6 }
  0x16   :  { %749 = vmatpush3.bf16.msra.mxu1 %v795_v13 }
  0x17   :  { %719 = vmatpush3.bf16.msra.mxu0 %v780_v6  ;;  %750 = vmatprep.subr.bf16.mxu1 %v796_v21 }
  0x18   :  { %720 = vmatprep.subr.bf16.mxu0 %v781_v9 }
  0x1a   :  { %751 = vmatpush3.bf16.msra.mxu1 %v796_v21 }
  0x1b   :  { %721 = vmatpush3.bf16.msra.mxu0 %v781_v9  ;;  %752 = vmatprep.subr.bf16.mxu1 %v797_v22 }
  0x1c   :  { %722 = vmatprep.subr.bf16.mxu0 %v782_v11 }
  0x1e   :  { %753 = vmatpush3.bf16.msra.mxu1 %v797_v22 }
  0x1f   :  { %723 = vmatpush3.bf16.msra.mxu0 %v782_v11  ;;  %754 = vmatprep.subr.bf16.mxu1 %v798_v23 }
  0x22   :  { %725 = vmatmul.mubr.bf16.vlgmr.msra.gmra.mrb[0].mxu0 %v784_v14  ;;  %755 = vmatpush3.bf16.msra.mxu1 %v798_v23 }
  0x23   :  { %728 = vmatprep.mubr.bf16.mxu0 %v785_v15 }
  0x2a   :  { %729 = vmatmul.mubr.bf16.gmra.mrb[4].mxu0 %v786_v16 }
  0x2b   :  { %732 = vmatprep.mubr.bf16.mxu0 %v787_v17 }
  0x32   :  { %733 = vmatmul.mubr.bf16.gmra.mrb[8].mxu0 %v788_v18 }
  0x33   :  { %736 = vmatprep.mubr.bf16.mxu0 %v789_v19 }
  0x3a   :  { %737 = vmatmul.mubr.bf16.gmra.mrb[12].mxu0 %v790_v20 }
  0xf5   :  { %v726_v25 = vpop.f32.mrb[0].mxu0 }
  0xf6   :  { %v199_v26 = vadd.f32 %v726_v25, %v969_v24  ;;  %v190_v27 = vpop.f32.mrb[1].mxu0 }
  0xf7   :  { %v191_v28 = vadd.f32 %v969_v24, %v190_v27  ;;  %v727_v29 = vpop.f32.mrb[2].mxu0 }
  0xf8   :  { %v271_v30 = vmul.f32 0.01, %v199_v26  ;;  %v202_v31 = vadd.f32 %v727_v29, %v969_v24  ;;  %v193_v32 = vpop.f32.mrb[3].mxu0  ;;  %vm255_vm0 = vcmp.gt.f32.partialorder %v199_v26, 0.0 }
  0xf9   :  { %v269_v33 = vmul.f32 0.01, %v191_v28  ;;  %v194_v34 = vadd.f32 %v969_v24, %v193_v32  ;;  %vm253_vm2 = vcmp.gt.f32.partialorder %v191_v28, 0.0 }
  0xfa   :  { %vm256_vm1 = vcmp.gt.f32.partialorder %v202_v31, 0.0  ;;  %v272_v35 = vmul.f32 0.01, %v202_v31  ;;  %v287_v37 = vsel %vm255_vm0, %v199_v26, %v271_v30 }
  0xfb   :  { %v270_v36 = vmul.f32 0.01, %v194_v34  ;;  %vm254_vm3 = vcmp.gt.f32.partialorder %v194_v34, 0.0  ;;  %v285_v40 = vsel %vm253_vm2, %v191_v28, %v269_v33 }
  0xfc   :  { %v288_v38 = vsel %vm256_vm1, %v202_v31, %v272_v35 }
  0xfd   :  { %v730_v39 = vpop.f32.mrb[4].mxu0  ;;  %v286_v41 = vsel %vm254_vm3, %v194_v34, %v270_v36  ;;  %v302_v42 = vpack.c.bf16 %v288_v38, %v287_v37  ;;  %v477_v34 = vlaneseq }
  0xfe   :  { %v215_v43 = vadd.f32 %v730_v39, %v969_v24  ;;  %v206_v44 = vpop.f32.mrb[5].mxu0  ;;  %v301_v45 = vpack.c.bf16 %v286_v41, %v285_v40 }
  0xff   :  { %v207_v46 = vadd.f32 %v969_v24, %v206_v44  ;;  %v731_v47 = vpop.f32.mrb[6].mxu0  ;;  %v987_v35 = vand.u32 127, %v477_v34 }
 0x100   :  { %v275_v48 = vmul.f32 0.01, %v215_v43  ;;  %v218_v49 = vadd.f32 %v731_v47, %v969_v24  ;;  %v209_v50 = vpop.f32.mrb[7].mxu0  ;;  %756 = vmatprep.mubr.bf16.mxu1 %v301_v45  ;;  %vm259_vm4 = vcmp.gt.f32.partialorder %v215_v43, 0.0 }
 0x101   :  { %v273_v51 = vmul.f32 0.01, %v207_v46  ;;  %v210_v52 = vadd.f32 %v969_v24, %v209_v50  ;;  %757 = vmatmul.mubr.bf16.vlgmr.msra.gmra.mrb[0].mxu1 %v302_v42  ;;  %vm257_vm5 = vcmp.gt.f32.partialorder %v207_v46, 0.0  ;;  %vm495_vm3 = vcmp.lt.s32.totalorder %v987_v35, 45  ;;  %v1002_v42 = vld [vmem:[%s1233_s4] ss:$0 sm:$0xff] }
 0x102   :  { %vm260_vm6 = vcmp.gt.f32.partialorder %v218_v49, 0.0  ;;  %v276_v53 = vmul.f32 0.01, %v218_v49  ;;  %v291_v55 = vsel %vm259_vm4, %v215_v43, %v275_v48 }
 0x103   :  { %vm258_vm7 = vcmp.gt.f32.partialorder %v210_v52, 0.0  ;;  %v274_v54 = vmul.f32 0.01, %v210_v52  ;;  %v289_v58 = vsel %vm257_vm5, %v207_v46, %v273_v51 }
 0x104   :  { %v292_v56 = vsel %vm260_vm6, %v218_v49, %v276_v53 }
 0x105   :  { %v734_v57 = vpop.f32.mrb[8].mxu0  ;;  %v290_v59 = vsel %vm258_vm7, %v210_v52, %v274_v54  ;;  %v304_v60 = vpack.c.bf16 %v292_v56, %v291_v55 }
 0x106   :  { %v231_v61 = vadd.f32 %v734_v57, %v969_v24  ;;  %v222_v62 = vpop.f32.mrb[9].mxu0  ;;  %v303_v63 = vpack.c.bf16 %v290_v59, %v289_v58 }
 0x107   :  { %v223_v0 = vadd.f32 %v969_v24, %v222_v62  ;;  %v735_v1 = vpop.f32.mrb[10].mxu0 }
 0x108   :  { %v279_v2 = vmul.f32 0.01, %v231_v61  ;;  %v234_v3 = vadd.f32 %v735_v1, %v969_v24  ;;  %v225_v4 = vpop.f32.mrb[11].mxu0  ;;  %760 = vmatprep.mubr.bf16.mxu1 %v303_v63  ;;  %vm263_vm8 = vcmp.gt.f32.partialorder %v231_v61, 0.0 }
 0x109   :  { %v277_v5 = vmul.f32 0.01, %v223_v0  ;;  %v226_v6 = vadd.f32 %v969_v24, %v225_v4  ;;  %761 = vmatmul.mubr.bf16.gmra.mrb[4].mxu1 %v304_v60  ;;  %vm261_vm9 = vcmp.gt.f32.partialorder %v223_v0, 0.0 }
 0x10a   :  { %vm264_vm10 = vcmp.gt.f32.partialorder %v234_v3, 0.0  ;;  %v280_v7 = vmul.f32 0.01, %v234_v3  ;;  %v295_v9 = vsel %vm263_vm8, %v231_v61, %v279_v2 }
 0x10b   :  { %vm262_vm11 = vcmp.gt.f32.partialorder %v226_v6, 0.0  ;;  %v278_v8 = vmul.f32 0.01, %v226_v6  ;;  %v293_v12 = vsel %vm261_vm9, %v223_v0, %v277_v5 }
 0x10c   :  { %v296_v10 = vsel %vm264_vm10, %v234_v3, %v280_v7 }
 0x10d   :  { %v738_v11 = vpop.f32.mrb[12].mxu0  ;;  %v294_v13 = vsel %vm262_vm11, %v226_v6, %v278_v8  ;;  %v306_v14 = vpack.c.bf16 %v296_v10, %v295_v9 }
 0x10e   :  { %v247_v15 = vadd.f32 %v738_v11, %v969_v24  ;;  %v238_v16 = vpop.f32.mrb[13].mxu0  ;;  %v305_v17 = vpack.c.bf16 %v294_v13, %v293_v12 }
 0x10f   :  { %v239_v18 = vadd.f32 %v969_v24, %v238_v16  ;;  %v739_v19 = vpop.f32.mrb[14].mxu0 }
 0x110   :  { %v283_v20 = vmul.f32 0.01, %v247_v15  ;;  %v250_v21 = vadd.f32 %v739_v19, %v969_v24  ;;  %v241_v22 = vpop.f32.mrb[15].mxu0  ;;  %764 = vmatprep.mubr.bf16.mxu1 %v305_v17  ;;  %vm267_vm12 = vcmp.gt.f32.partialorder %v247_v15, 0.0 }
 0x111   :  { %v281_v23 = vmul.f32 0.01, %v239_v18  ;;  %v242_v25 = vadd.f32 %v969_v24, %v241_v22  ;;  %765 = vmatmul.mubr.bf16.gmra.mrb[8].mxu1 %v306_v14  ;;  %vm265_vm13 = vcmp.gt.f32.partialorder %v239_v18, 0.0 }
 0x112   :  { %vm268_vm14 = vcmp.gt.f32.partialorder %v250_v21, 0.0  ;;  %v284_v26 = vmul.f32 0.01, %v250_v21  ;;  %v299_v28 = vsel %vm267_vm12, %v247_v15, %v283_v20 }
 0x113   :  { %vm266_vm15 = vcmp.gt.f32.partialorder %v242_v25, 0.0  ;;  %v282_v27 = vmul.f32 0.01, %v242_v25  ;;  %v297_v30 = vsel %vm265_vm13, %v239_v18, %v281_v23 }
 0x114   :  { %v300_v29 = vsel %vm268_vm14, %v250_v21, %v284_v26  ;;  %v990_v36 = vmul.u32.u64.low 3435973837, %v987_v35  ;;  %v991_v24 = vmul.u32.u64.high 3435973837, %v987_v35, %v990_v36 }
 0x115   :  { %v298_v31 = vsel %vm266_vm15, %v242_v25, %v282_v27  ;;  %v308_v32 = vpack.c.bf16 %v300_v29, %v299_v28 }
 0x116   :  { %v307_v33 = vpack.c.bf16 %v298_v31, %v297_v30  ;;  %v485_v37 = vshrl.u32 %v991_v24, 2 }
 0x118   :  { %768 = vmatprep.mubr.bf16.mxu1 %v307_v33  ;;  %v486_v38 = vmul.u32 5, %v485_v37 }
 0x119   :  { %769 = vmatmul.mubr.bf16.gmra.mrb[12].mxu1 %v308_v32 }
 0x11a   :  { %v487_v39 = vsub.s32 %v987_v35, %v486_v38 }
 0x11c   :  { %vm490_vm0 = vcmp.ne.s32.totalorder %v487_v39, 0  ;;  %vm491_vm1 = vcmp.lt.s32.totalorder %v487_v39, 0  ;;  %v493_v40 = vadd.s32 5, %v487_v39 }
 0x11d   :  { %vm492_vm2 = vmand %vm491_vm1, %vm490_vm0 }
 0x11e   :  { %v995_v41 = vsel %vm492_vm2, %v493_v40, %v487_v39 }
 0x11f   :  { %vm496_vm4 = vcmp.le.s32.totalorder %v995_v41, 2  ;;  %vm498_vm6 = vcmp.ge.s32.totalorder %v995_v41, 1 }
 0x120   :  { %vm1008_vm5 = vmand %vm495_vm3, %vm496_vm4 }
 0x121   :  { %vm499_vm7 = vmand %vm495_vm3, %vm498_vm6 }
 0x122   :  { %vm500_vm8 = vmand %vm499_vm7, %vm496_vm4 }
 0x1d4   :  { %v758_v43 = vpop.f32.mrb[0].mxu1 }
 0x1d5   :  { %v1013_v45 = vadd.f32 %v758_v43, %v1002_v42  ;;  %v414_v46 = vpop.f32.mrb[1].mxu1 }
 0x1d6   :  { %v1016_v47 = vadd.f32 %v1002_v42, %v414_v46  ;;  %v759_v48 = vpop.f32.mrb[2].mxu1 }
 0x1d7   :  { %v503_v49 = vsel %vm1008_vm5, %v1013_v45, 0.0  ;;  %v1022_v50 = vadd.f32 %v759_v48, %v1002_v42  ;;  %v417_v51 = vpop.f32.mrb[3].mxu1 }
 0x1d8   :  { %v519_v52 = vsub.f32 0.0, %v503_v49  ;;  %v501_v53 = vsel %vm1008_vm5, %v1016_v47, 0.0  ;;  %v1028_v54 = vadd.f32 %v1002_v42, %v417_v51 }
 0x1d9   :  { %v517_v55 = vsub.f32 0.0, %v501_v53  ;;  %v504_v56 = vsel %vm1008_vm5, %v1022_v50, 0.0 }
 0x1da   :  { %v537_v57 = vmul.f32 1.442695, %v519_v52  ;;  %v520_v58 = vsub.f32 0.0, %v504_v56  ;;  %v502_v59 = vsel %vm1008_vm5, %v1028_v54, 0.0 }
 0x1db   :  { %v533_v60 = vmul.f32 1.442695, %v517_v55  ;;  %v518_v61 = vsub.f32 0.0, %v502_v59 }
 0x1dc   :  { %799 = vpow2.f32 %v537_v57  ;;  %v539_v62 = vmul.f32 1.442695, %v520_v58  ;;  %v762_v63 = vpop.f32.mrb[4].mxu1  ;;  %v863_v58 = vmov 0.0  }
 0x1dd   :  { %801 = vpow2.f32 %v533_v60  ;;  %v535_v0 = vmul.f32 1.442695, %v518_v61  ;;  %v1037_v1 = vadd.f32 %v762_v63, %v1002_v42  ;;  %v430_v2 = vpop.f32.mrb[5].mxu1  ;;  %v1094_v59 = vsel %vm500_vm8, 0.5, %v863_v58 }
 0x1de   :  { %803 = vpow2.f32 %v539_v62  ;;  %v1040_v3 = vadd.f32 %v1002_v42, %v430_v2  ;;  %v763_v4 = vpop.f32.mrb[6].mxu1 }
 0x1df   :  { %805 = vpow2.f32 %v535_v0  ;;  %v507_v5 = vsel %vm1008_vm5, %v1037_v1, 0.0  ;;  %v1046_v6 = vadd.f32 %v763_v4, %v1002_v42  ;;  %v433_v7 = vpop.f32.mrb[7].mxu1 }
 0x1e0   :  { %v523_v8 = vsub.f32 0.0, %v507_v5  ;;  %v505_v9 = vsel %vm1008_vm5, %v1040_v3, 0.0  ;;  %v1052_v10 = vadd.f32 %v1002_v42, %v433_v7 }
 0x1e1   :  { %v521_v11 = vsub.f32 0.0, %v505_v9  ;;  %v508_v12 = vsel %vm1008_vm5, %v1046_v6, 0.0 }
 0x1e2   :  { %v545_v13 = vmul.f32 1.442695, %v523_v8  ;;  %v524_v14 = vsub.f32 0.0, %v508_v12  ;;  %v506_v15 = vsel %vm1008_vm5, %v1052_v10, 0.0 }
 0x1e3   :  { %v541_v16 = vmul.f32 1.442695, %v521_v11  ;;  %v522_v17 = vsub.f32 0.0, %v506_v15 }
 0x1e4   :  { %807 = vpow2.f32 %v545_v13  ;;  %v547_v18 = vmul.f32 1.442695, %v524_v14  ;;  %v766_v19 = vpop.f32.mrb[8].mxu1 }
 0x1e5   :  { %809 = vpow2.f32 %v541_v16  ;;  %v543_v20 = vmul.f32 1.442695, %v522_v17  ;;  %v1062_v21 = vadd.f32 %v766_v19, %v1002_v42  ;;  %v446_v22 = vpop.f32.mrb[9].mxu1 }
 0x1e6   :  { %v800_v23 = vpop.eup %799  ;;  %811 = vpow2.f32 %v547_v18  ;;  %v1065_v25 = vadd.f32 %v1002_v42, %v446_v22  ;;  %v767_v26 = vpop.f32.mrb[10].mxu1 }
 0x1e7   :  { %v802_v27 = vpop.eup %801  ;;  %v567_v28 = vadd.f32 1.0, %v800_v23  ;;  %813 = vpow2.f32 %v543_v20  ;;  %v511_v29 = vsel %vm1008_vm5, %v1062_v21, 0.0  ;;  %v1071_v30 = vadd.f32 %v767_v26, %v1002_v42  ;;  %v449_v31 = vpop.f32.mrb[11].mxu1 }
 0x1e8   :  { %v804_v32 = vpop.eup %803  ;;  %v565_v33 = vadd.f32 1.0, %v802_v27  ;;  %v527_v34 = vsub.f32 0.0, %v511_v29  ;;  %v509_v36 = vsel %vm1008_vm5, %v1065_v25, 0.0  ;;  %v1081_v24 = vadd.f32 %v1002_v42, %v449_v31 }
 0x1e9   :  { %v806_v37 = vpop.eup %805  ;;  %815 = vrcp.f32 %v567_v28  ;;  %v568_v38 = vadd.f32 1.0, %v804_v32  ;;  %v525_v39 = vsub.f32 0.0, %v509_v36  ;;  %v512_v40 = vsel %vm1008_vm5, %v1071_v30, 0.0 }
 0x1ea   :  { %817 = vrcp.f32 %v565_v33  ;;  %v566_v35 = vadd.f32 1.0, %v806_v37  ;;  %v553_v43 = vmul.f32 1.442695, %v527_v34  ;;  %v528_v46 = vsub.f32 0.0, %v512_v40 }
 0x1eb   :  { %819 = vrcp.f32 %v568_v38  ;;  %v549_v48 = vmul.f32 1.442695, %v525_v39  ;;  %v510_v49 = vsel %vm1008_vm5, %v1081_v24, 0.0 }
 0x1ec   :  { %821 = vrcp.f32 %v566_v35  ;;  %v555_v51 = vmul.f32 1.442695, %v528_v46  ;;  %v526_v52 = vsub.f32 0.0, %v510_v49  ;;  %v770_v53 = vpop.f32.mrb[12].mxu1 }
 0x1ed   :  { %823 = vpow2.f32 %v553_v43  ;;  %v1092_v55 = vadd.f32 %v770_v53, %v1002_v42  ;;  %v462_v56 = vpop.f32.mrb[13].mxu1 }
 0x1ee   :  { %v808_v57 = vpop.eup %807  ;;  %825 = vpow2.f32 %v549_v48  ;;  %v551_v41 = vmul.f32 1.442695, %v526_v52  ;;  %v1097_v60 = vadd.f32 %v1002_v42, %v462_v56  ;;  %v771_v61 = vpop.f32.mrb[14].mxu1 }
 0x1ef   :  { %v810_v62 = vpop.eup %809  ;;  %v571_v63 = vadd.f32 1.0, %v808_v57  ;;  %827 = vpow2.f32 %v555_v51  ;;  %v515_v0 = vsel %vm1008_vm5, %v1092_v55, 0.0  ;;  %v1103_v2 = vadd.f32 %v771_v61, %v1002_v42  ;;  %v465_v4 = vpop.f32.mrb[15].mxu1 }
 0x1f0   :  { %v812_v5 = vpop.eup %811  ;;  %v569_v7 = vadd.f32 1.0, %v810_v62  ;;  %829 = vpow2.f32 %v551_v41  ;;  %v531_v8 = vsub.f32 0.0, %v515_v0  ;;  %v513_v9 = vsel %vm1008_vm5, %v1097_v60, 0.0 }
 0x1f1   :  { %v814_v11 = vpop.eup %813  ;;  %831 = vrcp.f32 %v571_v63  ;;  %v572_v12 = vadd.f32 1.0, %v812_v5  ;;  %v529_v13 = vsub.f32 0.0, %v513_v9  ;;  %v516_v14 = vsel %vm1008_vm5, %v1103_v2, 0.0 }
 0x1f2   :  { %833 = vrcp.f32 %v569_v7  ;;  %v570_v15 = vadd.f32 1.0, %v814_v11  ;;  %v561_v16 = vmul.f32 1.442695, %v531_v8  ;;  %v532_v17 = vsub.f32 0.0, %v516_v14 }
 0x1f3   :  { %v816_v18 = vpop.eup %815  ;;  %835 = vrcp.f32 %v572_v12  ;;  %v557_v19 = vmul.f32 1.442695, %v529_v13  ;;  %v1112_v20 = vadd.f32 %v1002_v42, %v465_v4 }
 0x1f4   :  { %v818_v22 = vpop.eup %817  ;;  %v600_v23 = vsel %vm1008_vm5, %v816_v18, %v1013_v45  ;;  %837 = vrcp.f32 %v570_v15  ;;  %v563_v26 = vmul.f32 1.442695, %v532_v17 }
 0x1f5   :  { %v820_v27 = vpop.eup %819  ;;  %v616_v28 = vsub.f32 %v600_v23, %v1094_v59  ;;  %v598_v29 = vsel %vm1008_vm5, %v818_v22, %v1016_v47  ;;  %839 = vpow2.f32 %v561_v16  ;;  %v514_v42 = vsel %vm1008_vm5, %v1112_v20, 0.0 }
 0x1f6   :  { %v822_v31 = vpop.eup %821  ;;  %v614_v32 = vsub.f32 %v598_v29, %v1094_v59  ;;  %v601_v45 = vsel %vm1008_vm5, %v820_v27, %v1022_v50  ;;  %841 = vpow2.f32 %v557_v19  ;;  %v530_v33 = vsub.f32 0.0, %v514_v42 }
 0x1f7   :  { %v824_v34 = vpop.eup %823  ;;  %632 = vst [vmem:[%s1234_s5 + $0x10] sm:$0xff] %v616_v28  ;;  %v617_v47 = vsub.f32 %v601_v45, %v1094_v59  ;;  %v599_v36 = vsel %vm1008_vm5, %v822_v31, %v1028_v54  ;;  %843 = vpow2.f32 %v563_v26 }
 0x1f8   :  { %v826_v37 = vpop.eup %825  ;;  %630 = vst [vmem:[%s1234_s5] sm:$0xff] %v614_v32  ;;  %v615_v50 = vsub.f32 %v599_v36, %v1094_v59  ;;  %v575_v38 = vadd.f32 1.0, %v824_v34  ;;  %v559_v43 = vmul.f32 1.442695, %v530_v33 }
 0x1f9   :  { %v828_v39 = vpop.eup %827  ;;  %633 = vst [vmem:[%s1234_s5 + $0x18] sm:$0xff] %v617_v47  ;;  %v573_v40 = vadd.f32 1.0, %v826_v37 }
 0x1fa   :  { %v830_v35 = vpop.eup %829  ;;  %631 = vst [vmem:[%s1234_s5 + $0x8] sm:$0xff] %v615_v50  ;;  %845 = vrcp.f32 %v575_v38  ;;  %v576_v54 = vadd.f32 1.0, %v828_v39 }
 0x1fb   :  { %v832_v46 = vpop.eup %831  ;;  %847 = vrcp.f32 %v573_v40  ;;  %v574_v48 = vadd.f32 1.0, %v830_v35 }
 0x1fc   :  { %v834_v49 = vpop.eup %833  ;;  %v604_v51 = vsel %vm1008_vm5, %v832_v46, %v1037_v1  ;;  %849 = vrcp.f32 %v576_v54 }
 0x1fd   :  { %v836_v52 = vpop.eup %835  ;;  %v620_v53 = vsub.f32 %v604_v51, %v1094_v59  ;;  %v602_v56 = vsel %vm1008_vm5, %v834_v49, %v1040_v3  ;;  %851 = vrcp.f32 %v574_v48 }
 0x1fe   :  { %v838_v57 = vpop.eup %837  ;;  %v618_v58 = vsub.f32 %v602_v56, %v1094_v59  ;;  %v605_v41 = vsel %vm1008_vm5, %v836_v52, %v1046_v6  ;;  %853 = vpow2.f32 %v559_v43 }
 0x1ff   :  { %v840_v61 = vpop.eup %839  ;;  %636 = vst [vmem:[%s1234_s5 + $0x30] sm:$0xff] %v620_v53  ;;  %v621_v1 = vsub.f32 %v605_v41, %v1094_v59  ;;  %v603_v3 = vsel %vm1008_vm5, %v838_v57, %v1052_v10 }
 0x200   :  { %v842_v62 = vpop.eup %841  ;;  %634 = vst [vmem:[%s1234_s5 + $0x20] sm:$0xff] %v618_v58  ;;  %v619_v63 = vsub.f32 %v603_v3, %v1094_v59  ;;  %v579_v6 = vadd.f32 1.0, %v840_v61 }
 0x201   :  { %v844_v0 = vpop.eup %843  ;;  %637 = vst [vmem:[%s1234_s5 + $0x38] sm:$0xff] %v621_v1  ;;  %v577_v4 = vadd.f32 1.0, %v842_v62 }
 0x202   :  { %635 = vst [vmem:[%s1234_s5 + $0x28] sm:$0xff] %v619_v63  ;;  %855 = vrcp.f32 %v579_v6  ;;  %v580_v10 = vadd.f32 1.0, %v844_v0 }
 0x203   :  { %857 = vrcp.f32 %v577_v4 }
 0x204   :  { %v846_v5 = vpop.eup %845  ;;  %859 = vrcp.f32 %v580_v10 }
 0x205   :  { %v848_v7 = vpop.eup %847  ;;  %v608_v8 = vsel %vm1008_vm5, %v846_v5, %v1062_v21 }
 0x206   :  { %v850_v9 = vpop.eup %849  ;;  %v624_v11 = vsub.f32 %v608_v8, %v1094_v59  ;;  %v606_v12 = vsel %vm1008_vm5, %v848_v7, %v1065_v25 }
 0x207   :  { %v852_v13 = vpop.eup %851  ;;  %v622_v14 = vsub.f32 %v606_v12, %v1094_v59  ;;  %v609_v15 = vsel %vm1008_vm5, %v850_v9, %v1071_v30 }
 0x208   :  { %v854_v16 = vpop.eup %853  ;;  %640 = vst [vmem:[%s1234_s5 + $0x50] sm:$0xff] %v624_v11  ;;  %v625_v21 = vsub.f32 %v609_v15, %v1094_v59  ;;  %v607_v17 = vsel %vm1008_vm5, %v852_v13, %v1081_v24 }
 0x209   :  { %638 = vst [vmem:[%s1234_s5 + $0x40] sm:$0xff] %v622_v14  ;;  %v623_v25 = vsub.f32 %v607_v17, %v1094_v59  ;;  %v578_v18 = vadd.f32 1.0, %v854_v16 }
 0x20a   :  { %641 = vst [vmem:[%s1234_s5 + $0x58] sm:$0xff] %v625_v21 }
 0x20b   :  { %639 = vst [vmem:[%s1234_s5 + $0x48] sm:$0xff] %v623_v25  ;;  %861 = vrcp.f32 %v578_v18 }
 0x20c   :  { %v856_v30 = vpop.eup %855 }
 0x20d   :  { %v858_v19 = vpop.eup %857  ;;  %v612_v24 = vsel %vm1008_vm5, %v856_v30, %v1092_v55 }
 0x20e   :  { %v860_v22 = vpop.eup %859  ;;  %v628_v23 = vsub.f32 %v612_v24, %v1094_v59  ;;  %v610_v26 = vsel %vm1008_vm5, %v858_v19, %v1097_v60 }
 0x20f   :  { %v626_v27 = vsub.f32 %v610_v26, %v1094_v59  ;;  %v613_v28 = vsel %vm1008_vm5, %v860_v22, %v1103_v2 }
 0x210   :  { %644 = vst [vmem:[%s1234_s5 + $0x70] sm:$0xff] %v628_v23  ;;  %v629_v29 = vsub.f32 %v613_v28, %v1094_v59 }
 0x211   :  { %642 = vst [vmem:[%s1234_s5 + $0x60] sm:$0xff] %v626_v27 }
 0x212   :  { %645 = vst [vmem:[%s1234_s5 + $0x78] sm:$0xff] %v629_v29 }
 0x215   :  { %v862_v55 = vpop.eup %861 }
 0x216   :  { %v611_v60 = vsel %vm1008_vm5, %v862_v55, %v1112_v20 }
 0x217   :  { %v627_v2 = vsub.f32 %v611_v60, %v1094_v59 }
 0x219   :  { %643 = vst [vmem:[%s1234_s5 + $0x68] sm:$0xff] %v627_v2 }

</bundles_post_ra>
